<compile_context>
chip_gen: v6e
topology: v6e:2x2x1
jax: 0.10.0
libtpu: 0.0.40
codegen_flags: <defaults>
</compile_context>

<pallas_src>
import functools

import jax
import jax.numpy as jnp
from jax.experimental import pallas as pl
from jax.experimental.pallas import tpu as pltpu


def _round_up(x: int, m: int) -> int:
    return ((x + m - 1) // m) * m


def _sublane_align(dtype) -> int:
    # 8 rows for 4-byte dtypes, 16 for bf16/f16, 32 for int8/fp8 packing.
    return max(8, 32 // jnp.dtype(dtype).itemsize)


def _pick_tm(M: int, tm_max: int, align: int) -> int:
    """Largest row tile <= tm_max that is sublane-aligned; prefers a tile that
    divides M exactly so the wrapper never has to pad (extra HBM pass)."""
    tm_max = max(align, (tm_max // align) * align)
    if M <= tm_max:
        return _round_up(M, align)
    lo = max(align, (tm_max // 2 // align) * align)   # don't shrink below tm_max/2
    for tm in range(tm_max, lo - 1, -align):
        if M % tm == 0:
            return tm
    return tm_max                                     # rare: fall back to padding


def _linear_kernel(x_ref, w_ref, b_ref, o_ref):
    # MXU matmul with f32 accumulation; bias add in f32 (v5e VPU has no bf16),
    # single cast at the store.
    acc = jnp.dot(x_ref[...], w_ref[...], preferred_element_type=jnp.float32)
    o_ref[...] = (acc + b_ref[...].astype(jnp.float32)).astype(o_ref.dtype)


@functools.partial(
    jax.jit, static_argnames=("tm_max", "use_pallas", "core_parallel"))
def clause_embedding(x, w_t, b, *, tm_max: int = 4096, use_pallas=None,
                     core_parallel: bool = False):
    """y = x @ w_t + b over the last dim.

    x:   (B, S, node_size)
    w_t: (node_size, clause_size)   (== PyTorch Linear weight, transposed)
    b:   (clause_size,)
    """
    B, S, node_size = x.shape
    clause_size = w_t.shape[1]
    M = B * S
    itemsize = jnp.dtype(x.dtype).itemsize

    # --- tiny-problem guard: pallas_call launch overhead exceeds useful work.
    if use_pallas is None:
        use_pallas = M * node_size >= (1 << 16)
    if not use_pallas:
        y = x.reshape(M, node_size) @ w_t + b
        return y.reshape(B, S, clause_size)

    # --- tile selection ------------------------------------------------------
    align = _sublane_align(x.dtype)
    # Cap TM so double-buffered, lane-padded x + out tiles stay ~<= 12 MiB
    # (safe under v5e's 16 MiB scoped-VMEM default; trivially fine elsewhere).
    lane = 128
    bytes_per_row = 2 * itemsize * (_round_up(node_size, lane) +
                                    _round_up(clause_size, lane))
    vmem_budget = 12 * 1024 * 1024
    tm_cap = max(align, (vmem_budget // bytes_per_row) // align * align)
    TM = _pick_tm(M, min(tm_max, tm_cap), align)
    M_pad = _round_up(M, TM)
    grid_m = M_pad // TM

    x2d = x.reshape(M, node_size)
    if M_pad != M:  # only when no dividing tile was found near tm_max
        x2d = jnp.pad(x2d, ((0, M_pad - M), (0, 0)))
    b2d = b.reshape(1, clause_size)

    # --- megacore semantics --------------------------------------------------
    # CORE_PARALLEL actually splits M tiles across v7x's two TensorCores
    # (per perf review); keep it opt-in so single-TC chips use plain codegen.
    if core_parallel and grid_m >= 2 and grid_m % 2 == 0:
        dim_sem = (pltpu.CORE_PARALLEL,)
    else:
        dim_sem = ("parallel",)

    cost = pl.CostEstimate(
        flops=2 * M_pad * node_size * clause_size,
        transcendentals=0,
        bytes_accessed=itemsize * (M_pad * node_size      # x read
                                   + node_size * clause_size  # W read
                                   + clause_size              # b read
                                   + M_pad * clause_size),    # out write
    )

    out2d = pl.pallas_call(
        _linear_kernel,
        out_shape=jax.ShapeDtypeStruct((M_pad, clause_size), x.dtype),
        grid_spec=pltpu.PrefetchScalarGridSpec(
            num_scalar_prefetch=0,
            grid=(grid_m,),
            in_specs=[
                # x: tiled along M, streams through VMEM (double-buffered).
                pl.BlockSpec((TM, node_size), lambda i: (i, 0)),
                # W, b: constant index_map -> resident, DMA'd once.
                pl.BlockSpec((node_size, clause_size), lambda i: (0, 0)),
                pl.BlockSpec((1, clause_size), lambda i: (0, 0)),
            ],
            out_specs=pl.BlockSpec((TM, clause_size), lambda i: (i, 0)),
        ),
        compiler_params=pltpu.CompilerParams(dimension_semantics=dim_sem),
        cost_estimate=cost,
    )(x2d, w_t, b2d)

    if M_pad != M:
        out2d = out2d[:M]
    return out2d.reshape(B, S, clause_size)


if __name__ == "__main__":
    # args.node_size = 32, args.clause_size = 64 (synthetic, small)
    node_size = 32
    clause_size = 64
    batch, seq = 2, 8

    key = jax.random.PRNGKey(0)
    kx, kw, kb = jax.random.split(key, 3)

    # Deterministic parameter init mimicking nn.Linear (uniform +/- 1/sqrt(fan_in)).
    bound = 1.0 / (node_size ** 0.5)
    W = jax.random.uniform(kw, (clause_size, node_size), jnp.float32, -bound, bound)
    b = jax.random.uniform(kb, (clause_size,), jnp.float32, -bound, bound)
    x = jax.random.normal(kx, (batch, seq, node_size), jnp.float32)

    y_ref = x @ W.T + b

    # 1) f32 path, small shape (force the Pallas kernel past the size guard):
    #    tight reference check.
    y = clause_embedding(x, W.T, b, use_pallas=True)
    y = jax.block_until_ready(y)
    assert y.shape == (batch, seq, clause_size)
    assert jnp.allclose(y, y_ref, atol=1e-5, rtol=1e-5)

    # 2) bf16 inputs (halved HBM traffic), f32 MXU accumulation: looser check.
    y_bf16 = clause_embedding(x.astype(jnp.bfloat16), W.T.astype(jnp.bfloat16),
                              b.astype(jnp.bfloat16), use_pallas=True)
    y_bf16 = jax.block_until_ready(y_bf16)
    assert y_bf16.dtype == jnp.bfloat16
    assert jnp.allclose(y_bf16.astype(jnp.float32), y_ref, atol=5e-2, rtol=5e-2)

    # 3) larger shape exercising the tiled, double-buffered path (grid_m > 1).
    xl = jax.random.normal(kx, (8, 1024, node_size), jnp.float32)
    yl = jax.block_until_ready(clause_embedding(xl, W.T, b))
    assert yl.shape == (8, 1024, clause_size)
    assert jnp.allclose(yl, xl @ W.T + b, atol=1e-3, rtol=1e-3)

    print("KERNEL_OK")
</pallas_src>

<mosaic_0001>
module attributes {stable_mosaic.version = 11 : i64} {
  func.func @_linear_kernel(%arg0: i32, %arg1: memref<16x32xf32, #tpu.memory_space<vmem>>, %arg2: memref<32x64xf32, #tpu.memory_space<vmem>>, %arg3: memref<1x64xf32, #tpu.memory_space<vmem>>, %arg4: memref<16x64xf32, #tpu.memory_space<vmem>>) attributes {dimension_semantics = [#tpu.dimension_semantics<parallel>], iteration_bounds = array<i64: 1>, scalar_prefetch = 0 : i64, scratch_operands = 0 : i64, tpu.core_type = #tpu.core_type<tc>, window_params = [{transform_indices = @transform_0, window_bounds = array<i64: 16, 32>}, {pipeline_mode = #tpu.pipeline_mode<synchronous>, transform_indices = @transform_1, window_bounds = array<i64: 32, 64>}, {pipeline_mode = #tpu.pipeline_mode<synchronous>, transform_indices = @transform_2, window_bounds = array<i64: 1, 64>}, {transform_indices = @transform_3, window_bounds = array<i64: 16, 64>}]} {
    %c0 = arith.constant 0 : index
    %c0_0 = arith.constant 0 : index
    %0 = vector.load %arg1[%c0, %c0_0] : memref<16x32xf32, #tpu.memory_space<vmem>>, vector<16x32xf32>
    %c0_1 = arith.constant 0 : index
    %c0_2 = arith.constant 0 : index
    %1 = vector.load %arg2[%c0_1, %c0_2] : memref<32x64xf32, #tpu.memory_space<vmem>>, vector<32x64xf32>
    %cst = arith.constant dense<0.000000e+00> : vector<16x64xf32>
    %2 = tpu.matmul %0, %1, %cst {dimension_numbers = #tpu.dot_dimension_numbers<[1], [0], [0], [1], [0, 0, 1, 1], [], []>} : vector<16x32xf32>, vector<32x64xf32>, vector<16x64xf32> -> vector<16x64xf32>
    %c0_3 = arith.constant 0 : index
    %c0_4 = arith.constant 0 : index
    %3 = vector.load %arg3[%c0_3, %c0_4] : memref<1x64xf32, #tpu.memory_space<vmem>>, vector<1x64xf32>
    %4 = vector.broadcast %3 : vector<1x64xf32> to vector<16x64xf32>
    %5 = arith.addf %2, %4 : vector<16x64xf32>
    %c0_5 = arith.constant 0 : index
    %c0_6 = arith.constant 0 : index
    %6 = vector.load %arg4[%c0_5, %c0_6] : memref<16x64xf32, #tpu.memory_space<vmem>>, vector<16x64xf32>
    tpu.vector_store %arg4[%c0_5, %c0_6], %5 {strides = array<i32>} : memref<16x64xf32, #tpu.memory_space<vmem>>, vector<16x64xf32>,
    return
  }
  func.func @transform_0(%arg0: i32) -> (i32, i32) {
    %c0_i32 = arith.constant 0 : i32
    %c0_i32_0 = arith.constant 0 : i32
    return %arg0, %c0_i32 : i32, i32
  }
  func.func @transform_1(%arg0: i32) -> (i32, i32) {
    %c0_i32 = arith.constant 0 : i32
    %c0_i32_0 = arith.constant 0 : i32
    %c0_i32_1 = arith.constant 0 : i32
    return %c0_i32, %c0_i32_0 : i32, i32
  }
  func.func @transform_2(%arg0: i32) -> (i32, i32) {
    %c0_i32 = arith.constant 0 : i32
    %c0_i32_0 = arith.constant 0 : i32
    %c0_i32_1 = arith.constant 0 : i32
    return %c0_i32, %c0_i32_0 : i32, i32
  }
  func.func @transform_3(%arg0: i32) -> (i32, i32) {
    %c0_i32 = arith.constant 0 : i32
    %c0_i32_0 = arith.constant 0 : i32
    return %arg0, %c0_i32 : i32, i32
  }
}

</mosaic_0001>

<bundles_post_ra>
// kernel: clause_embedding.1
= control target key start
LH: loop header
LB: loop body
LE: loop exit
PB: predicated region body
PF: predicated region fallthrough
CT: control target
= control target key end

     0   :  { %8 = vsyncpa [#allocation3], 0  ;;  %s298_s0 = inlined_call_operand.hbm [shape: f32[16,32], index: 0, kind: input, shape index: {}]   ;;  %s299_s1 = inlined_call_operand.hbm [shape: f32[32,64], index: 1, kind: input, shape index: {}]   ;;  %s300_s2 = inlined_call_operand.vmem [shape: f32[1,64], index: 2, kind: input, shape index: {}]   ;;  %s301_s3 = inlined_call_operand.hbm [shape: f32[16,64], index: 3, kind: output, shape index: {}]  }
   0x1   :  { %9 = vsyncpa [#allocation6], 0 }
   0x2   :  { %10 = vsyncpa [#allocation4], 0  ;;  %s250_s12 = smov [#allocation2]  }
   0x3   :  { %s16_s13 = sshll.u32 %s250_s12, 4  ;;  %s17_s13 = int_to_ptr.vmem [resolvable:$true] %s16_s13 }
   0x4   :  { %s192_s14 = scalar_lea.vmem %s17_s13, 256  ;;  %p197_p1 = scmp.lt.s32.totalorder %s17_s13, %s17_s13 }
   0x5   :  { %p193_p0 = scmp.ne.s32.totalorder %s17_s13, %s192_s14  ;;  %p198_p2 = scmp.lt.s32.totalorder %s192_s14, %s192_s14 }
   0x7   :  { %p199_p3 = por %p198_p2, %p197_p1 }
   0x9   :  { %p200_p4 = pnand %p199_p3, %p193_p0 }
   0xb   :  { %203 = shalt.err (!%p200_p4)
}
   0xc   :  { %s251_s15 = smov 128   ;;  %s252_s16 = smov 8  }
   0xd   :  { %22 = dma.hbm_to_vmem [thread:$0]  %s298_s0, 256, %s17_s13, [#allocation3], %s251_s15, %s251_s15, %s252_s16  }
   0xe   :  { %s253_s19 = smov [#allocation5]  }
   0xf   :  { %s28_s20 = sshll.u32 %s253_s19, 4  ;;  %s29_s20 = int_to_ptr.vmem [resolvable:$true] %s28_s20 }
  0x10   :  { %s212_s21 = scalar_lea.vmem %s29_s20, 512  ;;  %p217_p6 = scmp.lt.s32.totalorder %s29_s20, %s29_s20 }
  0x11   :  { %p213_p5 = scmp.ne.s32.totalorder %s29_s20, %s212_s21  ;;  %p218_p7 = scmp.lt.s32.totalorder %s212_s21, %s212_s21 }
  0x13   :  { %p219_p8 = por %p218_p7, %p217_p6 }
  0x15   :  { %p220_p9 = pnand %p219_p8, %p213_p5 }
  0x17   :  { %223 = shalt.err (!%p220_p9)
}
  0x18   :  { %34 = dma.hbm_to_vmem [thread:$0]  %s299_s1, 512, %s29_s20, [#allocation6], %s251_s15, %s251_s15, %s252_s16  }
  0x19   :  { %244 = dma.done.wait [#allocation3], 256  }
  0x1a   :  { %245 = vsyncadd [#allocation3], 4294967040 }
  0x1b   :  { %246 = dma.done.wait [#allocation6], 512  }
  0x1c   :  { %247 = vsyncadd [#allocation6], 4294966784  ;;  %vm56_vm0 = vcmask 261120   ;;  %v48_v0 = vld [vmem:[#allocation5 + $0x18] sm:$0xff]  ;;  %v47_v1 = vld [vmem:[#allocation5 + $0x10] sm:$0xff]  ;;  %vm138_vm1 = vcmask 523264  }
  0x1d   :  { %168 = vmatprep.subr.mxu0 %v48_v0  ;;  %v43_v2 = vld [vmem:[#allocation2] sm:$0xff]  ;;  %v46_v3 = vld [vmem:[#allocation5 + $0x8] sm:$0xff]  ;;  %v45_v4 = vld [vmem:[#allocation5] sm:$0xff]  ;;  %s254_s24 = smov [#allocation7]  }
  0x1e   :  { %169 = vmatpush3.msra.mxu0 %v48_v0  ;;  %176 = vmatprep.mubr.msk.f32.mxu0 %vm56_vm0, %v43_v2  ;;  %v44_v5 = vld [vmem:[#allocation2 + $0x8] sm:$0xff]  ;;  %v159_v6 = vld [vmem:[%s300_s2] ss:$0 sm:$0xff]  ;;  %s146_s25 = sshll.u32 %s254_s24, 4  ;;  %s147_s25 = int_to_ptr.vmem [resolvable:$true] %s146_s25 }
  0x1f   :  { %170 = vmatprep.subr.mxu0 %v47_v1  ;;  %s224_s26 = scalar_lea.vmem %s147_s25, 256  ;;  %p229_p11 = scmp.lt.s32.totalorder %s147_s25, %s147_s25 }
  0x20   :  { %171 = vmatpush3.msra.mxu0 %v47_v1  ;;  %p225_p10 = scmp.ne.s32.totalorder %s147_s25, %s224_s26  ;;  %p230_p12 = scmp.lt.s32.totalorder %s224_s26, %s224_s26 }
  0x21   :  { %172 = vmatprep.subr.mxu0 %v46_v3 }
  0x22   :  { %173 = vmatpush3.msra.mxu0 %v46_v3  ;;  %p231_p13 = por %p230_p12, %p229_p11 }
  0x23   :  { %174 = vmatprep.subr.mxu0 %v45_v4 }
  0x24   :  { %175 = vmatpush3.msra.mxu0 %v45_v4  ;;  %p232_p0 = pnand %p231_p13, %p225_p10 }
  0x25   :  { %177 = vmatmul.mubr.msk.f32.vlgmr.msra.gmra.mxu0 %vm56_vm0, %v44_v5 }
  0xe5   :  { %v178_v7 = vpop.f32.mrf.mxu0 }
  0xe6   :  { %v135_v8 = vadd.f32 %v178_v7, %v159_v6 }
  0xe7   :  { %v129_v9 = vpop.f32.mrf.mxu0 }
  0xe8   :  { %v130_v10 = vadd.f32 %v159_v6, %v129_v9  ;;  %140 = vst.msk [vmem:[#allocation7 + $0x8] sm:$0xff] %vm138_vm1, %v135_v8 }
  0xea   :  { %139 = vst.msk [vmem:[#allocation7] sm:$0xff] %vm138_vm1, %v130_v10 }
  0xeb   :  { %235 = shalt.err (!%p232_p0)
}
  0xec   :  { %152 = dma.vmem_to_hbm [thread:$0]  %s147_s25, 256, %s301_s3, [#allocation4], %s251_s15, %s251_s15, %s252_s16  }
  0xed   :  { %248 = dma.done.wait [#allocation4], 256  }
  0xee   :  { %249 = vsyncadd [#allocation4], 4294967040 }
  0xef   :  { %156 = vsyncpa [#allocation3], 1 }
  0xf0   :  { %157 = vsyncpa [#allocation6], 1 }
  0xf1   :  { %158 = vsyncpa [#allocation4], 1 }

</bundles_post_ra>
